<compile_context>
chip_gen: v7x
topology: tpu7x:2x2x1
jax: 0.10.0
libtpu: 0.0.40
codegen_flags: <defaults>
</compile_context>

<pallas_src>
import jax
import jax.numpy as jnp
import numpy as np
from jax import lax
from jax.experimental import pallas as pl
from jax.experimental.pallas import tpu as pltpu

EPS = 1e-5

_VMEM_FULL = pl.BlockSpec(memory_space=pltpu.MemorySpace.VMEM)
_COMPILER_PARAMS = pltpu.CompilerParams(
    dimension_semantics=("parallel",),          # batch grid axis -> both TCs on v7x
    vmem_limit_bytes=48 * 1024 * 1024,
)


# --------------------------- kernel bodies ----------------------------------
def _stats(y):
    # one stacked lane reduction -> per-channel [sum(y); sum(y*y)], shape (2C, 1)
    yy = jnp.concatenate([y, y * y], axis=0)
    return jnp.sum(yy, axis=1, keepdims=True)


def _conv1x1_kernel(x_ref, w_ref, y_ref, st_ref):
    # (Cout, Cin) @ (Cin, HW) on the MXU; raw output + partial BN stats
    y = jnp.dot(w_ref[...], x_ref[0], preferred_element_type=jnp.float32)
    y_ref[0] = y
    st_ref[0] = _stats(y)


def _bn_relu_conv1x1_kernel(x_ref, s_ref, b_ref, w_ref, y_ref, st_ref):
    # folded BN (scale/bias FMA) + ReLU, then 1x1 conv matmul
    a = jnp.maximum(x_ref[0] * s_ref[...] + b_ref[...], 0.0)
    y = jnp.dot(w_ref[...], a, preferred_element_type=jnp.float32)
    y_ref[0] = y
    st_ref[0] = _stats(y)


def _make_bn_relu_conv3x3_kernel(H, W, Cp):
    HW = H * W

    def kernel(x_ref, s_ref, b_ref, w_ref, mask_ref, y_ref, st_ref, patch_ref):
        # folded BN + ReLU
        a = jnp.maximum(x_ref[0] * s_ref[...] + b_ref[...], 0.0)      # (Cp, HW)
        masks = mask_ref[...]                                          # (9, HW)
        # fused im2col: 9 rolled+masked taps written straight into VMEM scratch
        for t in range(9):
            oi, oj = t // 3 - 1, t % 3 - 1
            off = oi * W + oj                       # flat offset of this tap
            tap = a if off == 0 else pltpu.roll(a, shift=(-off) % HW, axis=1)
            if t != 4:                              # center tap: no boundary mask
                tap = tap * masks[t:t + 1, :]
            patch_ref[t * Cp:(t + 1) * Cp, :] = tap
        # single fused K = 9*Cp matmul
        y = jnp.dot(w_ref[...], patch_ref[...], preferred_element_type=jnp.float32)
        y_ref[0] = y
        st_ref[0] = _stats(y)

    return kernel


def _bn_residual_relu_kernel(x_ref, s_ref, b_ref, id_ref, o_ref):
    y = x_ref[0] * s_ref[...] + b_ref[...]
    o_ref[0] = jnp.maximum(y + id_ref[0], 0.0).astype(o_ref.dtype)


# --------------------------- wrapper -----------------------------------------
def _finalize_bn(stats, gamma, beta, count):
    """stats: (N, 2C, 1) per-image [sum; sumsq] -> folded (scale, bias), (C,1)."""
    tot = jnp.sum(stats, axis=0)                      # (2C, 1) exact global sums
    C = tot.shape[0] // 2
    ssum, sqsum = tot[:C], tot[C:]
    mu = ssum / count
    var = jnp.maximum(sqsum / count - mu * mu, 0.0)   # biased batch variance
    scale = gamma.reshape(-1, 1) * lax.rsqrt(var + EPS)
    bias = beta.reshape(-1, 1) - mu * scale
    return scale, bias


def bottleneck_forward(x, w1, w2, w3, g1, b1, g2, b2, g3, b3):
    """x: (N, Cin, H, W) NCHW f32. Conv weights in PyTorch OIHW layout (bias=False),
    BN gamma/beta of shape (C,). Returns (N, Cout, H, W), Cout = planes*4."""
    N, Cin, H, W = x.shape
    width = w1.shape[0]
    Cout = w3.shape[0]
    assert Cin == Cout, "identity residual requires inplanes == planes*expansion"
    HW = H * W
    count = N * HW
    Cp = ((width + 7) // 8) * 8        # pad bottleneck width to sublane multiple

    # free reshape only (NCHW is contiguous) — no wrapper-side transposes
    x3 = x.reshape(N, Cin, HW)

    def pad_rows(a, n):
        return jnp.pad(a, ((0, n - a.shape[0]),) + ((0, 0),) * (a.ndim - 1))

    w1m = pad_rows(w1.reshape(width, Cin), Cp)                       # (Cp, Cin)
    w2p = jnp.pad(w2, ((0, Cp - width), (0, Cp - width), (0, 0), (0, 0)))
    w2m = w2p.transpose(0, 2, 3, 1).reshape(Cp, 9 * Cp)              # (Cp, 9*Cp)
    w3m = jnp.pad(w3.reshape(Cout, width), ((0, 0), (0, Cp - width)))  # (Cout, Cp)
    g1p = jnp.pad(g1, (0, Cp - width)); b1p = jnp.pad(b1, (0, Cp - width))
    g2p = jnp.pad(g2, (0, Cp - width)); b2p = jnp.pad(b2, (0, Cp - width))

    # precomputed 3x3 boundary masks (one row per tap) — no // or % in-kernel
    hh = np.arange(HW) // W
    ww = np.arange(HW) % W
    masks_np = np.empty((9, HW), np.float32)
    t = 0
    for oi in (-1, 0, 1):
        for oj in (-1, 0, 1):
            m = np.ones(HW, np.float32)
            if oi == -1: m *= (hh >= 1)
            if oi == 1:  m *= (hh <= H - 2)
            if oj == -1: m *= (ww >= 1)
            if oj == 1:  m *= (ww <= W - 2)
            masks_np[t] = m
            t += 1
    masks = jnp.asarray(masks_np)

    def act_spec(C):
        return pl.BlockSpec((1, C, HW), lambda n: (n, 0, 0))

    def st_spec(C):
        return pl.BlockSpec((1, 2 * C, 1), lambda n: (n, 0, 0))

    # ---- call 1: conv1 (1x1) + partial stats --------------------------------
    y1, st1 = pl.pallas_call(
        _conv1x1_kernel,
        grid=(N,),
        in_specs=[act_spec(Cin), _VMEM_FULL],
        out_specs=[act_spec(Cp), st_spec(Cp)],
        out_shape=[jax.ShapeDtypeStruct((N, Cp, HW), jnp.float32),
                   jax.ShapeDtypeStruct((N, 2 * Cp, 1), jnp.float32)],
        compiler_params=_COMPILER_PARAMS,
    )(x3, w1m)
    s1, bi1 = _finalize_bn(st1, g1p, b1p, count)

    # ---- call 2: bn1+relu -> conv2 (3x3, pad=1) + partial stats -------------
    y2, st2 = pl.pallas_call(
        _make_bn_relu_conv3x3_kernel(H, W, Cp),
        grid=(N,),
        in_specs=[act_spec(Cp), _VMEM_FULL, _VMEM_FULL, _VMEM_FULL, _VMEM_FULL],
        out_specs=[act_spec(Cp), st_spec(Cp)],
        out_shape=[jax.ShapeDtypeStruct((N, Cp, HW), jnp.float32),
                   jax.ShapeDtypeStruct((N, 2 * Cp, 1), jnp.float32)],
        scratch_shapes=[pltpu.VMEM((9 * Cp, HW), jnp.float32)],
        compiler_params=_COMPILER_PARAMS,
    )(y1, s1, bi1, w2m, masks)
    s2, bi2 = _finalize_bn(st2, g2p, b2p, count)

    # ---- call 3: bn2+relu -> conv3 (1x1) + partial stats ---------------------
    y3, st3 = pl.pallas_call(
        _bn_relu_conv1x1_kernel,
        grid=(N,),
        in_specs=[act_spec(Cp), _VMEM_FULL, _VMEM_FULL, _VMEM_FULL],
        out_specs=[act_spec(Cout), st_spec(Cout)],
        out_shape=[jax.ShapeDtypeStruct((N, Cout, HW), jnp.float32),
                   jax.ShapeDtypeStruct((N, 2 * Cout, 1), jnp.float32)],
        compiler_params=_COMPILER_PARAMS,
    )(y2, s2, bi2, w3m)
    s3, bi3 = _finalize_bn(st3, g3, b3, count)

    # ---- call 4: bn3 -> +identity -> relu ------------------------------------
    out3 = pl.pallas_call(
        _bn_residual_relu_kernel,
        grid=(N,),
        in_specs=[act_spec(Cout), _VMEM_FULL, _VMEM_FULL, act_spec(Cin)],
        out_specs=act_spec(Cout),
        out_shape=jax.ShapeDtypeStruct((N, Cout, HW), x.dtype),
        compiler_params=_COMPILER_PARAMS,
    )(y3, s3, bi3, x3)

    return out3.reshape(N, Cout, H, W)


# ---------------- pure-JAX reference (NCHW, for correctness check) -----------
def _bn_ref(y, g, b, relu):
    mu = jnp.mean(y, axis=(0, 2, 3), keepdims=True)
    var = jnp.mean((y - mu) ** 2, axis=(0, 2, 3), keepdims=True)
    yn = (y - mu) / jnp.sqrt(var + EPS) * g.reshape(1, -1, 1, 1) + b.reshape(1, -1, 1, 1)
    return jnp.maximum(yn, 0.0) if relu else yn


def reference_forward(x, w1, w2, w3, g1, b1, g2, b2, g3, b3):
    dn = ('NCHW', 'OIHW', 'NCHW')
    y = lax.conv_general_dilated(x, w1, (1, 1), 'VALID', dimension_numbers=dn)
    y = _bn_ref(y, g1, b1, True)
    y = lax.conv_general_dilated(y, w2, (1, 1), ((1, 1), (1, 1)), dimension_numbers=dn)
    y = _bn_ref(y, g2, b2, True)
    y = lax.conv_general_dilated(y, w3, (1, 1), 'VALID', dimension_numbers=dn)
    y = _bn_ref(y, g3, b3, False)
    return jnp.maximum(y + x, 0.0)


if __name__ == "__main__":
    # Module config (small): inplanes=16, planes=4 -> width=4, out=planes*4=16
    inplanes, planes = 16, 4
    width = planes                 # base_width=64, groups=1 -> width = planes
    cout = planes * 4              # expansion = 4
    N, H, W = 2, 16, 16

    key = jax.random.PRNGKey(0)
    ks = jax.random.split(key, 10)

    x = jax.random.normal(ks[0], (N, inplanes, H, W), jnp.float32)

    # Conv weights in PyTorch OIHW layout (bias=False in the module).
    w1 = jax.random.normal(ks[1], (width, inplanes, 1, 1), jnp.float32) * 0.1
    w2 = jax.random.normal(ks[2], (width, width, 3, 3), jnp.float32) * 0.1
    w3 = jax.random.normal(ks[3], (cout, width, 1, 1), jnp.float32) * 0.1

    # BatchNorm affine params.
    g1 = jax.random.uniform(ks[4], (width,), jnp.float32, 0.5, 1.5)
    b1 = jax.random.normal(ks[5], (width,), jnp.float32) * 0.1
    g2 = jax.random.uniform(ks[6], (width,), jnp.float32, 0.5, 1.5)
    b2 = jax.random.normal(ks[7], (width,), jnp.float32) * 0.1
    g3 = jax.random.uniform(ks[8], (cout,), jnp.float32, 0.5, 1.5)
    b3 = jax.random.normal(ks[9], (cout,), jnp.float32) * 0.1

    fwd = jax.jit(bottleneck_forward)
    out = fwd(x, w1, w2, w3, g1, b1, g2, b2, g3, b3)
    out = jax.block_until_ready(out)

    ref = reference_forward(x, w1, w2, w3, g1, b1, g2, b2, g3, b3)
    np.testing.assert_allclose(np.asarray(out), np.asarray(ref),
                               rtol=1e-4, atol=1e-4)
    print("KERNEL_OK")
</pallas_src>

<mosaic_0001>
module attributes {stable_mosaic.version = 11 : i64} {
  func.func @_conv1x1_kernel(%arg0: i32, %arg1: memref<1x16x256xf32, #tpu.memory_space<vmem>>, %arg2: memref<8x16xf32, #tpu.memory_space<vmem>>, %arg3: memref<1x8x256xf32, #tpu.memory_space<vmem>>, %arg4: memref<1x16x1xf32, #tpu.memory_space<vmem>>) attributes {dimension_semantics = [#tpu.dimension_semantics<parallel>], iteration_bounds = array<i64: 2>, scalar_prefetch = 0 : i64, scratch_operands = 0 : i64, tpu.core_type = #tpu.core_type<tc>, window_params = [{transform_indices = @transform_0, window_bounds = array<i64: 1, 16, 256>}, {pipeline_mode = #tpu.pipeline_mode<synchronous>, transform_indices = @transform_1, window_bounds = array<i64: 8, 16>}, {transform_indices = @transform_2, window_bounds = array<i64: 1, 8, 256>}, {transform_indices = @transform_3, window_bounds = array<i64: 1, 16, 1>}]} {
    %c0 = arith.constant 0 : index
    %c0_0 = arith.constant 0 : index
    %0 = vector.load %arg2[%c0, %c0_0] : memref<8x16xf32, #tpu.memory_space<vmem>>, vector<8x16xf32>
    %c0_1 = arith.constant 0 : index
    %c0_2 = arith.constant 0 : index
    %c0_3 = arith.constant 0 : index
    %1 = vector.load %arg1[%c0_1, %c0_2, %c0_3] : memref<1x16x256xf32, #tpu.memory_space<vmem>>, vector<1x16x256xf32>
    %2 = vector.shape_cast %1 : vector<1x16x256xf32> to vector<16x256xf32>
    %cst = arith.constant dense<0.000000e+00> : vector<8x256xf32>
    %3 = tpu.matmul %0, %2, %cst {dimension_numbers = #tpu.dot_dimension_numbers<[1], [0], [0], [1], [0, 0, 1, 1], [], []>} : vector<8x16xf32>, vector<16x256xf32>, vector<8x256xf32> -> vector<8x256xf32>
    %c0_4 = arith.constant 0 : index
    %c0_5 = arith.constant 0 : index
    %c0_6 = arith.constant 0 : index
    %4 = vector.load %arg3[%c0_4, %c0_5, %c0_6] : memref<1x8x256xf32, #tpu.memory_space<vmem>>, vector<1x8x256xf32>
    %5 = vector.shape_cast %4 : vector<1x8x256xf32> to vector<8x256xf32>
    %6 = vector.shape_cast %3 : vector<8x256xf32> to vector<1x8x256xf32>
    tpu.vector_store %arg3[%c0_4, %c0_5, %c0_6], %6 {strides = array<i32>} : memref<1x8x256xf32, #tpu.memory_space<vmem>>, vector<1x8x256xf32>,
    %7 = arith.mulf %3, %3 : vector<8x256xf32>
    %8 = tpu.concatenate %3, %7 in 0 : vector<8x256xf32>, vector<8x256xf32> -> vector<16x256xf32>
    %cst_7 = arith.constant dense<0.000000e+00> : vector<16xf32>
    %9 = vector.multi_reduction <add>, %8, %cst_7 [1] : vector<16x256xf32> to vector<16xf32>
    %10 = vector.shape_cast %9 : vector<16xf32> to vector<16x1xf32>
    %c0_8 = arith.constant 0 : index
    %c0_9 = arith.constant 0 : index
    %c0_10 = arith.constant 0 : index
    %11 = vector.load %arg4[%c0_8, %c0_9, %c0_10] : memref<1x16x1xf32, #tpu.memory_space<vmem>>, vector<1x16x1xf32>
    %12 = vector.shape_cast %11 : vector<1x16x1xf32> to vector<16x1xf32>
    %13 = vector.shape_cast %10 : vector<16x1xf32> to vector<1x16x1xf32>
    tpu.vector_store %arg4[%c0_8, %c0_9, %c0_10], %13 {strides = array<i32>} : memref<1x16x1xf32, #tpu.memory_space<vmem>>, vector<1x16x1xf32>,
    return
  }
  func.func @transform_0(%arg0: i32) -> (i32, i32, i32) {
    %c0_i32 = arith.constant 0 : i32
    %c0_i32_0 = arith.constant 0 : i32
    %c0_i32_1 = arith.constant 0 : i32
    return %arg0, %c0_i32, %c0_i32_0 : i32, i32, i32
  }
  func.func @transform_1(%arg0: i32) -> (i32, i32) {
    %c0_i32 = arith.constant 0 : i32
    %c0_i32_0 = arith.constant 0 : i32
    %c0_i32_1 = arith.constant 0 : i32
    return %c0_i32, %c0_i32_0 : i32, i32
  }
  func.func @transform_2(%arg0: i32) -> (i32, i32, i32) {
    %c0_i32 = arith.constant 0 : i32
    %c0_i32_0 = arith.constant 0 : i32
    %c0_i32_1 = arith.constant 0 : i32
    return %arg0, %c0_i32, %c0_i32_0 : i32, i32, i32
  }
  func.func @transform_3(%arg0: i32) -> (i32, i32, i32) {
    %c0_i32 = arith.constant 0 : i32
    %c0_i32_0 = arith.constant 0 : i32
    %c0_i32_1 = arith.constant 0 : i32
    return %arg0, %c0_i32, %c0_i32_0 : i32, i32, i32
  }
}

module attributes {stable_mosaic.version = 11 : i64} {
  func.func @kernel(%arg0: i32, %arg1: memref<1x8x256xf32, #tpu.memory_space<vmem>>, %arg2: memref<8x1xf32, #tpu.memory_space<vmem>>, %arg3: memref<8x1xf32, #tpu.memory_space<vmem>>, %arg4: memref<8x72xf32, #tpu.memory_space<vmem>>, %arg5: memref<9x256xf32, #tpu.memory_space<vmem>>, %arg6: memref<1x8x256xf32, #tpu.memory_space<vmem>>, %arg7: memref<1x16x1xf32, #tpu.memory_space<vmem>>, %arg8: memref<72x256xf32, #tpu.memory_space<vmem>>) attributes {dimension_semantics = [#tpu.dimension_semantics<parallel>], iteration_bounds = array<i64: 2>, scalar_prefetch = 0 : i64, scratch_operands = 1 : i64, tpu.core_type = #tpu.core_type<tc>, window_params = [{transform_indices = @transform_0, window_bounds = array<i64: 1, 8, 256>}, {pipeline_mode = #tpu.pipeline_mode<synchronous>, transform_indices = @transform_1, window_bounds = array<i64: 8, 1>}, {pipeline_mode = #tpu.pipeline_mode<synchronous>, transform_indices = @transform_2, window_bounds = array<i64: 8, 1>}, {pipeline_mode = #tpu.pipeline_mode<synchronous>, transform_indices = @transform_3, window_bounds = array<i64: 8, 72>}, {pipeline_mode = #tpu.pipeline_mode<synchronous>, transform_indices = @transform_4, window_bounds = array<i64: 9, 256>}, {transform_indices = @transform_5, window_bounds = array<i64: 1, 8, 256>}, {transform_indices = @transform_6, window_bounds = array<i64: 1, 16, 1>}]} {
    %c0 = arith.constant 0 : index
    %c0_0 = arith.constant 0 : index
    %c0_1 = arith.constant 0 : index
    %0 = vector.load %arg1[%c0, %c0_0, %c0_1] : memref<1x8x256xf32, #tpu.memory_space<vmem>>, vector<1x8x256xf32>
    %1 = vector.shape_cast %0 : vector<1x8x256xf32> to vector<8x256xf32>
    %c0_2 = arith.constant 0 : index
    %c0_3 = arith.constant 0 : index
    %2 = vector.load %arg2[%c0_2, %c0_3] : memref<8x1xf32, #tpu.memory_space<vmem>>, vector<8x1xf32>
    %3 = vector.broadcast %2 : vector<8x1xf32> to vector<8x256xf32>
    %4 = arith.mulf %1, %3 : vector<8x256xf32>
    %c0_4 = arith.constant 0 : index
    %c0_5 = arith.constant 0 : index
    %5 = vector.load %arg3[%c0_4, %c0_5] : memref<8x1xf32, #tpu.memory_space<vmem>>, vector<8x1xf32>
    %6 = vector.broadcast %5 : vector<8x1xf32> to vector<8x256xf32>
    %7 = arith.addf %4, %6 : vector<8x256xf32>
    %cst = arith.constant 0.000000e+00 : f32
    %8 = vector.broadcast %cst : f32 to vector<8x256xf32>
    %9 = arith.maximumf %7, %8 : vector<8x256xf32>
    %c0_6 = arith.constant 0 : index
    %c0_7 = arith.constant 0 : index
    %10 = vector.load %arg5[%c0_6, %c0_7] : memref<9x256xf32, #tpu.memory_space<vmem>>, vector<9x256xf32>
    %c17_i32 = arith.constant 17 : i32
    %11 = tpu.dynamic_rotate %9 by %c17_i32 dim 1 : vector<8x256xf32>, i32 -> vector<8x256xf32>
    %12 = vector.extract_strided_slice %10 {offsets = [0, 0], sizes = [1, 256], strides = [1, 1]} : vector<9x256xf32> to vector<1x256xf32>
    %13 = vector.broadcast %12 : vector<1x256xf32> to vector<8x256xf32>
    %14 = arith.mulf %11, %13 : vector<8x256xf32>
    %c0_8 = arith.constant 0 : index
    %c0_9 = arith.constant 0 : index
    %15 = vector.load %arg8[%c0_8, %c0_9] : memref<72x256xf32, #tpu.memory_space<vmem>>, vector<8x256xf32>
    tpu.vector_store %arg8[%c0_8, %c0_9], %14 {strides = array<i32>} : memref<72x256xf32, #tpu.memory_space<vmem>>, vector<8x256xf32>,
    %c16_i32 = arith.constant 16 : i32
    %16 = tpu.dynamic_rotate %9 by %c16_i32 dim 1 : vector<8x256xf32>, i32 -> vector<8x256xf32>
    %17 = vector.extract_strided_slice %10 {offsets = [1, 0], sizes = [1, 256], strides = [1, 1]} : vector<9x256xf32> to vector<1x256xf32>
    %18 = vector.broadcast %17 : vector<1x256xf32> to vector<8x256xf32>
    %19 = arith.mulf %16, %18 : vector<8x256xf32>
    %c8 = arith.constant 8 : index
    %c0_10 = arith.constant 0 : index
    %20 = vector.load %arg8[%c8, %c0_10] : memref<72x256xf32, #tpu.memory_space<vmem>>, vector<8x256xf32>
    tpu.vector_store %arg8[%c8, %c0_10], %19 {strides = array<i32>} : memref<72x256xf32, #tpu.memory_space<vmem>>, vector<8x256xf32>,
    %c15_i32 = arith.constant 15 : i32
    %21 = tpu.dynamic_rotate %9 by %c15_i32 dim 1 : vector<8x256xf32>, i32 -> vector<8x256xf32>
    %22 = vector.extract_strided_slice %10 {offsets = [2, 0], sizes = [1, 256], strides = [1, 1]} : vector<9x256xf32> to vector<1x256xf32>
    %23 = vector.broadcast %22 : vector<1x256xf32> to vector<8x256xf32>
    %24 = arith.mulf %21, %23 : vector<8x256xf32>
    %c16 = arith.constant 16 : index
    %c0_11 = arith.constant 0 : index
    %25 = vector.load %arg8[%c16, %c0_11] : memref<72x256xf32, #tpu.memory_space<vmem>>, vector<8x256xf32>
    tpu.vector_store %arg8[%c16, %c0_11], %24 {strides = array<i32>} : memref<72x256xf32, #tpu.memory_space<vmem>>, vector<8x256xf32>,
    %c1_i32 = arith.constant 1 : i32
    %26 = tpu.dynamic_rotate %9 by %c1_i32 dim 1 : vector<8x256xf32>, i32 -> vector<8x256xf32>
    %27 = vector.extract_strided_slice %10 {offsets = [3, 0], sizes = [1, 256], strides = [1, 1]} : vector<9x256xf32> to vector<1x256xf32>
    %28 = vector.broadcast %27 : vector<1x256xf32> to vector<8x256xf32>
    %29 = arith.mulf %26, %28 : vector<8x256xf32>
    %c24 = arith.constant 24 : index
    %c0_12 = arith.constant 0 : index
    %30 = vector.load %arg8[%c24, %c0_12] : memref<72x256xf32, #tpu.memory_space<vmem>>, vector<8x256xf32>
    tpu.vector_store %arg8[%c24, %c0_12], %29 {strides = array<i32>} : memref<72x256xf32, #tpu.memory_space<vmem>>, vector<8x256xf32>,
    %c32 = arith.constant 32 : index
    %c0_13 = arith.constant 0 : index
    %31 = vector.load %arg8[%c32, %c0_13] : memref<72x256xf32, #tpu.memory_space<vmem>>, vector<8x256xf32>
    tpu.vector_store %arg8[%c32, %c0_13], %9 {strides = array<i32>} : memref<72x256xf32, #tpu.memory_space<vmem>>, vector<8x256xf32>,
    %c255_i32 = arith.constant 255 : i32
    %32 = tpu.dynamic_rotate %9 by %c255_i32 dim 1 : vector<8x256xf32>, i32 -> vector<8x256xf32>
    %33 = vector.extract_strided_slice %10 {offsets = [5, 0], sizes = [1, 256], strides = [1, 1]} : vector<9x256xf32> to vector<1x256xf32>
    %34 = vector.broadcast %33 : vector<1x256xf32> to vector<8x256xf32>
    %35 = arith.mulf %32, %34 : vector<8x256xf32>
    %c40 = arith.constant 40 : index
    %c0_14 = arith.constant 0 : index
    %36 = vector.load %arg8[%c40, %c0_14] : memref<72x256xf32, #tpu.memory_space<vmem>>, vector<8x256xf32>
    tpu.vector_store %arg8[%c40, %c0_14], %35 {strides = array<i32>} : memref<72x256xf32, #tpu.memory_space<vmem>>, vector<8x256xf32>,
    %c241_i32 = arith.constant 241 : i32
    %37 = tpu.dynamic_rotate %9 by %c241_i32 dim 1 : vector<8x256xf32>, i32 -> vector<8x256xf32>
    %38 = vector.extract_strided_slice %10 {offsets = [6, 0], sizes = [1, 256], strides = [1, 1]} : vector<9x256xf32> to vector<1x256xf32>
    %39 = vector.broadcast %38 : vector<1x256xf32> to vector<8x256xf32>
    %40 = arith.mulf %37, %39 : vector<8x256xf32>
    %c48 = arith.constant 48 : index
    %c0_15 = arith.constant 0 : index
    %41 = vector.load %arg8[%c48, %c0_15] : memref<72x256xf32, #tpu.memory_space<vmem>>, vector<8x256xf32>
    tpu.vector_store %arg8[%c48, %c0_15], %40 {strides = array<i32>} : memref<72x256xf32, #tpu.memory_space<vmem>>, vector<8x256xf32>,
    %c240_i32 = arith.constant 240 : i32
    %42 = tpu.dynamic_rotate %9 by %c240_i32 dim 1 : vector<8x256xf32>, i32 -> vector<8x256xf32>
    %43 = vector.extract_strided_slice %10 {offsets = [7, 0], sizes = [1, 256], strides = [1, 1]} : vector<9x256xf32> to vector<1x256xf32>
    %44 = vector.broadcast %43 : vector<1x256xf32> to vector<8x256xf32>
    %45 = arith.mulf %42, %44 : vector<8x256xf32>
    %c56 = arith.constant 56 : index
    %c0_16 = arith.constant 0 : index
    %46 = vector.load %arg8[%c56, %c0_16] : memref<72x256xf32, #tpu.memory_space<vmem>>, vector<8x256xf32>
    tpu.vector_store %arg8[%c56, %c0_16], %45 {strides = array<i32>} : memref<72x256xf32, #tpu.memory_space<vmem>>, vector<8x256xf32>,
    %c239_i32 = arith.constant 239 : i32
    %47 = tpu.dynamic_rotate %9 by %c239_i32 dim 1 : vector<8x256xf32>, i32 -> vector<8x256xf32>
    %48 = vector.extract_strided_slice %10 {offsets = [8, 0], sizes = [1, 256], strides = [1, 1]} : vector<9x256xf32> to vector<1x256xf32>
    %49 = vector.broadcast %48 : vector<1x256xf32> to vector<8x256xf32>
    %50 = arith.mulf %47, %49 : vector<8x256xf32>
    %c64 = arith.constant 64 : index
    %c0_17 = arith.constant 0 : index
    %51 = vector.load %arg8[%c64, %c0_17] : memref<72x256xf32, #tpu.memory_space<vmem>>, vector<8x256xf32>
    tpu.vector_store %arg8[%c64, %c0_17], %50 {strides = array<i32>} : memref<72x256xf32, #tpu.memory_space<vmem>>, vector<8x256xf32>,
    %c0_18 = arith.constant 0 : index
    %c0_19 = arith.constant 0 : index
    %52 = vector.load %arg4[%c0_18, %c0_19] : memref<8x72xf32, #tpu.memory_space<vmem>>, vector<8x72xf32>
    %c0_20 = arith.constant 0 : index
    %c0_21 = arith.constant 0 : index
    %53 = vector.load %arg8[%c0_20, %c0_21] : memref<72x256xf32, #tpu.memory_space<vmem>>, vector<72x256xf32>
    %cst_22 = arith.constant dense<0.000000e+00> : vector<8x256xf32>
    %54 = tpu.matmul %52, %53, %cst_22 {dimension_numbers = #tpu.dot_dimension_numbers<[1], [0], [0], [1], [0, 0, 1, 1], [], []>} : vector<8x72xf32>, vector<72x256xf32>, vector<8x256xf32> -> vector<8x256xf32>
    %c0_23 = arith.constant 0 : index
    %c0_24 = arith.constant 0 : index
    %c0_25 = arith.constant 0 : index
    %55 = vector.load %arg6[%c0_23, %c0_24, %c0_25] : memref<1x8x256xf32, #tpu.memory_space<vmem>>, vector<1x8x256xf32>
    %56 = vector.shape_cast %55 : vector<1x8x256xf32> to vector<8x256xf32>
    %57 = vector.shape_cast %54 : vector<8x256xf32> to vector<1x8x256xf32>
    tpu.vector_store %arg6[%c0_23, %c0_24, %c0_25], %57 {strides = array<i32>} : memref<1x8x256xf32, #tpu.memory_space<vmem>>, vector<1x8x256xf32>,
    %58 = arith.mulf %54, %54 : vector<8x256xf32>
    %59 = tpu.concatenate %54, %58 in 0 : vector<8x256xf32>, vector<8x256xf32> -> vector<16x256xf32>
    %cst_26 = arith.constant dense<0.000000e+00> : vector<16xf32>
    %60 = vector.multi_reduction <add>, %59, %cst_26 [1] : vector<16x256xf32> to vector<16xf32>
    %61 = vector.shape_cast %60 : vector<16xf32> to vector<16x1xf32>
    %c0_27 = arith.constant 0 : index
    %c0_28 = arith.constant 0 : index
    %c0_29 = arith.constant 0 : index
    %62 = vector.load %arg7[%c0_27, %c0_28, %c0_29] : memref<1x16x1xf32, #tpu.memory_space<vmem>>, vector<1x16x1xf32>
    %63 = vector.shape_cast %62 : vector<1x16x1xf32> to vector<16x1xf32>
    %64 = vector.shape_cast %61 : vector<16x1xf32> to vector<1x16x1xf32>
    tpu.vector_store %arg7[%c0_27, %c0_28, %c0_29], %64 {strides = array<i32>} : memref<1x16x1xf32, #tpu.memory_space<vmem>>, vector<1x16x1xf32>,
    return
  }
  func.func @transform_0(%arg0: i32) -> (i32, i32, i32) {
    %c0_i32 = arith.constant 0 : i32
    %c0_i32_0 = arith.constant 0 : i32
    %c0_i32_1 = arith.constant 0 : i32
    return %arg0, %c0_i32, %c0_i32_0 : i32, i32, i32
  }
  func.func @transform_1(%arg0: i32) -> (i32, i32) {
    %c0_i32 = arith.constant 0 : i32
    %c0_i32_0 = arith.constant 0 : i32
    %c0_i32_1 = arith.constant 0 : i32
    return %c0_i32, %c0_i32_0 : i32, i32
  }
  func.func @transform_2(%arg0: i32) -> (i32, i32) {
    %c0_i32 = arith.constant 0 : i32
    %c0_i32_0 = arith.constant 0 : i32
    %c0_i32_1 = arith.constant 0 : i32
    return %c0_i32, %c0_i32_0 : i32, i32
  }
  func.func @transform_3(%arg0: i32) -> (i32, i32) {
    %c0_i32 = arith.constant 0 : i32
    %c0_i32_0 = arith.constant 0 : i32
    %c0_i32_1 = arith.constant 0 : i32
    return %c0_i32, %c0_i32_0 : i32, i32
  }
  func.func @transform_4(%arg0: i32) -> (i32, i32) {
    %c0_i32 = arith.constant 0 : i32
    %c0_i32_0 = arith.constant 0 : i32
    %c0_i32_1 = arith.constant 0 : i32
    return %c0_i32, %c0_i32_0 : i32, i32
  }
  func.func @transform_5(%arg0: i32) -> (i32, i32, i32) {
    %c0_i32 = arith.constant 0 : i32
    %c0_i32_0 = arith.constant 0 : i32
    %c0_i32_1 = arith.constant 0 : i32
    return %arg0, %c0_i32, %c0_i32_0 : i32, i32, i32
  }
  func.func @transform_6(%arg0: i32) -> (i32, i32, i32) {
    %c0_i32 = arith.constant 0 : i32
    %c0_i32_0 = arith.constant 0 : i32
    %c0_i32_1 = arith.constant 0 : i32
    return %arg0, %c0_i32, %c0_i32_0 : i32, i32, i32
  }
}

module attributes {stable_mosaic.version = 11 : i64} {
  func.func @_bn_relu_conv1x1_kernel(%arg0: i32, %arg1: memref<1x8x256xf32, #tpu.memory_space<vmem>>, %arg2: memref<8x1xf32, #tpu.memory_space<vmem>>, %arg3: memref<8x1xf32, #tpu.memory_space<vmem>>, %arg4: memref<16x8xf32, #tpu.memory_space<vmem>>, %arg5: memref<1x16x256xf32, #tpu.memory_space<vmem>>, %arg6: memref<1x32x1xf32, #tpu.memory_space<vmem>>) attributes {dimension_semantics = [#tpu.dimension_semantics<parallel>], iteration_bounds = array<i64: 2>, scalar_prefetch = 0 : i64, scratch_operands = 0 : i64, tpu.core_type = #tpu.core_type<tc>, window_params = [{transform_indices = @transform_0, window_bounds = array<i64: 1, 8, 256>}, {pipeline_mode = #tpu.pipeline_mode<synchronous>, transform_indices = @transform_1, window_bounds = array<i64: 8, 1>}, {pipeline_mode = #tpu.pipeline_mode<synchronous>, transform_indices = @transform_2, window_bounds = array<i64: 8, 1>}, {pipeline_mode = #tpu.pipeline_mode<synchronous>, transform_indices = @transform_3, window_bounds = array<i64: 16, 8>}, {transform_indices = @transform_4, window_bounds = array<i64: 1, 16, 256>}, {transform_indices = @transform_5, window_bounds = array<i64: 1, 32, 1>}]} {
    %c0 = arith.constant 0 : index
    %c0_0 = arith.constant 0 : index
    %c0_1 = arith.constant 0 : index
    %0 = vector.load %arg1[%c0, %c0_0, %c0_1] : memref<1x8x256xf32, #tpu.memory_space<vmem>>, vector<1x8x256xf32>
    %1 = vector.shape_cast %0 : vector<1x8x256xf32> to vector<8x256xf32>
    %c0_2 = arith.constant 0 : index
    %c0_3 = arith.constant 0 : index
    %2 = vector.load %arg2[%c0_2, %c0_3] : memref<8x1xf32, #tpu.memory_space<vmem>>, vector<8x1xf32>
    %3 = vector.broadcast %2 : vector<8x1xf32> to vector<8x256xf32>
    %4 = arith.mulf %1, %3 : vector<8x256xf32>
    %c0_4 = arith.constant 0 : index
    %c0_5 = arith.constant 0 : index
    %5 = vector.load %arg3[%c0_4, %c0_5] : memref<8x1xf32, #tpu.memory_space<vmem>>, vector<8x1xf32>
    %6 = vector.broadcast %5 : vector<8x1xf32> to vector<8x256xf32>
    %7 = arith.addf %4, %6 : vector<8x256xf32>
    %cst = arith.constant 0.000000e+00 : f32
    %8 = vector.broadcast %cst : f32 to vector<8x256xf32>
    %9 = arith.maximumf %7, %8 : vector<8x256xf32>
    %c0_6 = arith.constant 0 : index
    %c0_7 = arith.constant 0 : index
    %10 = vector.load %arg4[%c0_6, %c0_7] : memref<16x8xf32, #tpu.memory_space<vmem>>, vector<16x8xf32>
    %cst_8 = arith.constant dense<0.000000e+00> : vector<16x256xf32>
    %11 = tpu.matmul %10, %9, %cst_8 {dimension_numbers = #tpu.dot_dimension_numbers<[1], [0], [0], [1], [0, 0, 1, 1], [], []>} : vector<16x8xf32>, vector<8x256xf32>, vector<16x256xf32> -> vector<16x256xf32>
    %c0_9 = arith.constant 0 : index
    %c0_10 = arith.constant 0 : index
    %c0_11 = arith.constant 0 : index
    %12 = vector.load %arg5[%c0_9, %c0_10, %c0_11] : memref<1x16x256xf32, #tpu.memory_space<vmem>>, vector<1x16x256xf32>
    %13 = vector.shape_cast %12 : vector<1x16x256xf32> to vector<16x256xf32>
    %14 = vector.shape_cast %11 : vector<16x256xf32> to vector<1x16x256xf32>
    tpu.vector_store %arg5[%c0_9, %c0_10, %c0_11], %14 {strides = array<i32>} : memref<1x16x256xf32, #tpu.memory_space<vmem>>, vector<1x16x256xf32>,
    %15 = arith.mulf %11, %11 : vector<16x256xf32>
    %16 = tpu.concatenate %11, %15 in 0 : vector<16x256xf32>, vector<16x256xf32> -> vector<32x256xf32>
    %cst_12 = arith.constant dense<0.000000e+00> : vector<32xf32>
    %17 = vector.multi_reduction <add>, %16, %cst_12 [1] : vector<32x256xf32> to vector<32xf32>
    %18 = vector.shape_cast %17 : vector<32xf32> to vector<32x1xf32>
    %c0_13 = arith.constant 0 : index
    %c0_14 = arith.constant 0 : index
    %c0_15 = arith.constant 0 : index
    %19 = vector.load %arg6[%c0_13, %c0_14, %c0_15] : memref<1x32x1xf32, #tpu.memory_space<vmem>>, vector<1x32x1xf32>
    %20 = vector.shape_cast %19 : vector<1x32x1xf32> to vector<32x1xf32>
    %21 = vector.shape_cast %18 : vector<32x1xf32> to vector<1x32x1xf32>
    tpu.vector_store %arg6[%c0_13, %c0_14, %c0_15], %21 {strides = array<i32>} : memref<1x32x1xf32, #tpu.memory_space<vmem>>, vector<1x32x1xf32>,
    return
  }
  func.func @transform_0(%arg0: i32) -> (i32, i32, i32) {
    %c0_i32 = arith.constant 0 : i32
    %c0_i32_0 = arith.constant 0 : i32
    %c0_i32_1 = arith.constant 0 : i32
    return %arg0, %c0_i32, %c0_i32_0 : i32, i32, i32
  }
  func.func @transform_1(%arg0: i32) -> (i32, i32) {
    %c0_i32 = arith.constant 0 : i32
    %c0_i32_0 = arith.constant 0 : i32
    %c0_i32_1 = arith.constant 0 : i32
    return %c0_i32, %c0_i32_0 : i32, i32
  }
  func.func @transform_2(%arg0: i32) -> (i32, i32) {
    %c0_i32 = arith.constant 0 : i32
    %c0_i32_0 = arith.constant 0 : i32
    %c0_i32_1 = arith.constant 0 : i32
    return %c0_i32, %c0_i32_0 : i32, i32
  }
  func.func @transform_3(%arg0: i32) -> (i32, i32) {
    %c0_i32 = arith.constant 0 : i32
    %c0_i32_0 = arith.constant 0 : i32
    %c0_i32_1 = arith.constant 0 : i32
    return %c0_i32, %c0_i32_0 : i32, i32
  }
  func.func @transform_4(%arg0: i32) -> (i32, i32, i32) {
    %c0_i32 = arith.constant 0 : i32
    %c0_i32_0 = arith.constant 0 : i32
    %c0_i32_1 = arith.constant 0 : i32
    return %arg0, %c0_i32, %c0_i32_0 : i32, i32, i32
  }
  func.func @transform_5(%arg0: i32) -> (i32, i32, i32) {
    %c0_i32 = arith.constant 0 : i32
    %c0_i32_0 = arith.constant 0 : i32
    %c0_i32_1 = arith.constant 0 : i32
    return %arg0, %c0_i32, %c0_i32_0 : i32, i32, i32
  }
}

module attributes {stable_mosaic.version = 11 : i64} {
  func.func @_bn_residual_relu_kernel(%arg0: i32, %arg1: memref<1x16x256xf32, #tpu.memory_space<vmem>>, %arg2: memref<16x1xf32, #tpu.memory_space<vmem>>, %arg3: memref<16x1xf32, #tpu.memory_space<vmem>>, %arg4: memref<1x16x256xf32, #tpu.memory_space<vmem>>, %arg5: memref<1x16x256xf32, #tpu.memory_space<vmem>>) attributes {dimension_semantics = [#tpu.dimension_semantics<parallel>], iteration_bounds = array<i64: 2>, scalar_prefetch = 0 : i64, scratch_operands = 0 : i64, tpu.core_type = #tpu.core_type<tc>, window_params = [{transform_indices = @transform_0, window_bounds = array<i64: 1, 16, 256>}, {pipeline_mode = #tpu.pipeline_mode<synchronous>, transform_indices = @transform_1, window_bounds = array<i64: 16, 1>}, {pipeline_mode = #tpu.pipeline_mode<synchronous>, transform_indices = @transform_2, window_bounds = array<i64: 16, 1>}, {transform_indices = @transform_3, window_bounds = array<i64: 1, 16, 256>}, {transform_indices = @transform_4, window_bounds = array<i64: 1, 16, 256>}]} {
    %c0 = arith.constant 0 : index
    %c0_0 = arith.constant 0 : index
    %c0_1 = arith.constant 0 : index
    %0 = vector.load %arg1[%c0, %c0_0, %c0_1] : memref<1x16x256xf32, #tpu.memory_space<vmem>>, vector<1x16x256xf32>
    %1 = vector.shape_cast %0 : vector<1x16x256xf32> to vector<16x256xf32>
    %c0_2 = arith.constant 0 : index
    %c0_3 = arith.constant 0 : index
    %2 = vector.load %arg2[%c0_2, %c0_3] : memref<16x1xf32, #tpu.memory_space<vmem>>, vector<16x1xf32>
    %3 = vector.broadcast %2 : vector<16x1xf32> to vector<16x256xf32>
    %4 = arith.mulf %1, %3 : vector<16x256xf32>
    %c0_4 = arith.constant 0 : index
    %c0_5 = arith.constant 0 : index
    %5 = vector.load %arg3[%c0_4, %c0_5] : memref<16x1xf32, #tpu.memory_space<vmem>>, vector<16x1xf32>
    %6 = vector.broadcast %5 : vector<16x1xf32> to vector<16x256xf32>
    %7 = arith.addf %4, %6 : vector<16x256xf32>
    %c0_6 = arith.constant 0 : index
    %c0_7 = arith.constant 0 : index
    %c0_8 = arith.constant 0 : index
    %8 = vector.load %arg4[%c0_6, %c0_7, %c0_8] : memref<1x16x256xf32, #tpu.memory_space<vmem>>, vector<1x16x256xf32>
    %9 = vector.shape_cast %8 : vector<1x16x256xf32> to vector<16x256xf32>
    %10 = arith.addf %7, %9 : vector<16x256xf32>
    %cst = arith.constant 0.000000e+00 : f32
    %11 = vector.broadcast %cst : f32 to vector<16x256xf32>
    %12 = arith.maximumf %10, %11 : vector<16x256xf32>
    %c0_9 = arith.constant 0 : index
    %c0_10 = arith.constant 0 : index
    %c0_11 = arith.constant 0 : index
    %13 = vector.load %arg5[%c0_9, %c0_10, %c0_11] : memref<1x16x256xf32, #tpu.memory_space<vmem>>, vector<1x16x256xf32>
    %14 = vector.shape_cast %13 : vector<1x16x256xf32> to vector<16x256xf32>
    %15 = vector.shape_cast %12 : vector<16x256xf32> to vector<1x16x256xf32>
    tpu.vector_store %arg5[%c0_9, %c0_10, %c0_11], %15 {strides = array<i32>} : memref<1x16x256xf32, #tpu.memory_space<vmem>>, vector<1x16x256xf32>,
    return
  }
  func.func @transform_0(%arg0: i32) -> (i32, i32, i32) {
    %c0_i32 = arith.constant 0 : i32
    %c0_i32_0 = arith.constant 0 : i32
    %c0_i32_1 = arith.constant 0 : i32
    return %arg0, %c0_i32, %c0_i32_0 : i32, i32, i32
  }
  func.func @transform_1(%arg0: i32) -> (i32, i32) {
    %c0_i32 = arith.constant 0 : i32
    %c0_i32_0 = arith.constant 0 : i32
    %c0_i32_1 = arith.constant 0 : i32
    return %c0_i32, %c0_i32_0 : i32, i32
  }
  func.func @transform_2(%arg0: i32) -> (i32, i32) {
    %c0_i32 = arith.constant 0 : i32
    %c0_i32_0 = arith.constant 0 : i32
    %c0_i32_1 = arith.constant 0 : i32
    return %c0_i32, %c0_i32_0 : i32, i32
  }
  func.func @transform_3(%arg0: i32) -> (i32, i32, i32) {
    %c0_i32 = arith.constant 0 : i32
    %c0_i32_0 = arith.constant 0 : i32
    %c0_i32_1 = arith.constant 0 : i32
    return %arg0, %c0_i32, %c0_i32_0 : i32, i32, i32
  }
  func.func @transform_4(%arg0: i32) -> (i32, i32, i32) {
    %c0_i32 = arith.constant 0 : i32
    %c0_i32_0 = arith.constant 0 : i32
    %c0_i32_1 = arith.constant 0 : i32
    return %arg0, %c0_i32, %c0_i32_0 : i32, i32, i32
  }
}

</mosaic_0001>

<bundles_post_ra>
// kernel: bottleneck_forward.4
= control target key start
LH: loop header
LB: loop body
LE: loop exit
PB: predicated region body
PF: predicated region fallthrough
CT: control target
= control target key end

     0   :  { %s424_s12 = smov 0   ;;  %s447_s0 = inlined_call_operand.vmem [shape: f32[2,16,256], index: 0, kind: input, shape index: {}]   ;;  %s448_s1 = inlined_call_operand.vmem [shape: f32[8,16], index: 1, kind: input, shape index: {}]   ;;  %s449_s2 = inlined_call_operand.vmem [shape: f32[2,8,256], index: 2, kind: output, shape index: {0}]   ;;  %s450_s3 = inlined_call_operand.vmem [shape: f32[2,16,1], index: 3, kind: output, shape index: {1}]  }
   0x1 LB: > { %s365_s13 = sadd.s32 4294967295, %s401_s12   ;;  %p369_p0 = scmp.ge.s32.totalorder %s401_s12, 1  ;;  %s401_s12 = sphi %s424_s12, %s14_s12  }
   0x2   : > { %p140_p1 = scmp.lt.s32.totalorder %s401_s12, 3 }
   0x4   : > { %p141_p2 = pnand %p369_p0, %p140_p1 }
   0x5   : > { %p169_p3 = scmp.lt.s32.totalorder (!%p141_p2), %s365_s13, 1  ;;  %v403_v0 = vmov (!%p141_p2), 0.0   ;;  %v184_v7 = vld [vmem:[%s448_s1] sm:$0xff] (!%p141_p2)  ;;  %vm189_vm0 = vcmask (!%p141_p2), 130048   ;;  %vm274_vm1 = vcmask (!%p141_p2), 7168  }
   0x6   : > { %144 = sbr.rel (%p141_p2) target bundleno = 385 (0x181), region = 28  ;;  %257 = vmatprep.mubr.f32.mxu0 (!%p141_p2), %v403_v0 }
   0xd   : > { %s452_s13 = smov (!%p169_p3, %s365_s13), 1 }
   0xe   : > { %s379_s14 = sshll.u32 %s452_s13, 5  ;;  %s380_s20 = sshll.u32 %s452_s13, 4 }
   0xf   : > { %s173_s17 = scalar_lea.vmem %s447_s0, %s379_s14  ;;  %s178_s23 = scalar_lea.vmem %s449_s2, %s380_s20 }
  0x10   : > { %v186_v1 = vld [vmem:[%s173_s17 + $0x8] sm:$0xff]  ;;  %v188_v2 = vld [vmem:[%s173_s17 + $0x18] sm:$0xff]  ;;  %v185_v3 = vld [vmem:[%s173_s17] sm:$0xff]  ;;  %s183_s26 = scalar_lea.vmem %s450_s3, %s380_s20 }
  0x11   : > { %v382_v4 = vpack.c.bf16 %v188_v2, %v186_v1  ;;  %v187_v5 = vld [vmem:[%s173_s17 + $0x10] sm:$0xff] }
  0x12   : > { %v384_v6 = vpack.c.bf16 %v187_v5, %v185_v3 }
  0x13   : > { %383 = vmatprep.subr.bf16.mxu0 %v382_v4 }
  0x14   : > { %385 = vmatpush1.bf16.msra.mxu0 %v384_v6 }
  0x17   : > { %376 = vmatmul.mubr.msk.f32.vlgmr.msra.gmra.mrb[0].mxu0 %vm189_vm0, %v184_v7 }
  0xea   : > { %v259_v8 = vpop.f32.mrb[0].mxu0 }
  0xeb   : > { %v261_v9 = vpop.f32.mrb[1].mxu0  ;;  %264 = vst [vmem:[%s178_s23] sm:$0xff] %v259_v8  ;;  %v266_v10 = vmul.f32 %v259_v8, %v259_v8 }
  0xec   : > { %265 = vst [vmem:[%s178_s23 + $0x8] sm:$0xff] %v261_v9  ;;  %v267_v11 = vmul.f32 %v261_v9, %v261_v9  ;;  %v268_v12 = vadd.f32 %v261_v9, %v259_v8 }
  0xee   : > { %269 = vadd.xlane.f32.xlu0 %v268_v12  ;;  %v271_v13 = vadd.f32 %v267_v11, %v266_v10 }
  0xf2   : > { %272 = vadd.xlane.f32.xlu0 %v271_v13 }
 0x17b   : > { %v270_v14 = vpop.xlane.xlu0 %269 }
 0x17c   : > { %275 = vst.msk [vmem:[%s183_s26] sm:$0xff] %vm274_vm1, %v270_v14 }
 0x17f   : > { %v273_v15 = vpop.xlane.xlu0 %272 }
 0x180   : > { %276 = vst.msk [vmem:[%s183_s26 + $0x8] sm:$0xff] %vm274_vm1, %v273_v15 }
 0x181 PF: > { %s14_s12 = sadd.s32 1, %s401_s12  }
 0x182   : > { %p11_p4 = scmp.ge.s32.totalorder %s14_s12, 4  }
 0x184   :  { %13 = sbr.rel (!%p11_p4) target bundleno = 1 (0x1), region = 70 }

// kernel: bottleneck_forward.5
= control target key start
LH: loop header
LB: loop body
LE: loop exit
PB: predicated region body
PF: predicated region fallthrough
CT: control target
= control target key end

     0   :  { %s747_s21 = smov 0   ;;  %s852_s0 = inlined_call_operand.vmem [shape: f32[2,8,256], index: 0, kind: input, shape index: {}]   ;;  %s853_s1 = inlined_call_operand.vmem [shape: f32[8,1], index: 1, kind: input, shape index: {}]   ;;  %s854_s2 = inlined_call_operand.vmem [shape: f32[8,1], index: 2, kind: input, shape index: {}]   ;;  %s855_s3 = inlined_call_operand.vmem [shape: f32[8,72], index: 3, kind: input, shape index: {}]   ;;  %s856_s4 = inlined_call_operand.vmem [shape: f32[9,256], index: 4, kind: input, shape index: {}]   ;;  %s857_s5 = inlined_call_operand.vmem [shape: f32[2,8,256], index: 5, kind: output, shape index: {0}]   ;;  %s858_s6 = inlined_call_operand.vmem [shape: f32[2,16,1], index: 6, kind: output, shape index: {1}]  }
   0x1 LB: > { %s640_s22 = sadd.s32 4294967295, %s700_s21   ;;  %p644_p0 = scmp.ge.s32.totalorder %s700_s21, 1  ;;  %s700_s21 = sphi %s747_s21, %s17_s21  }
   0x2   : > { %p215_p1 = scmp.lt.s32.totalorder %s700_s21, 3 }
   0x4   : > { %p216_p2 = pnand %p644_p0, %p215_p1 }
   0x5   : > { %v267_v0 = vld [vmem:[%s853_s1] sm:$0xff] (!%p216_p2)  ;;  %v702_v1 = vmov (!%p216_p2), 0   ;;  %p250_p3 = scmp.lt.s32.totalorder (!%p216_p2), %s640_s22, 1  ;;  %s703_s7 = smov (!%p216_p2), 16   ;;  %v711_v13 = vmov (!%p216_p2), 0.0   ;;  %v293_v14 = vlaneseq (!%p216_p2)  ;;  %v801_v22 = vld [vmem:[%s856_s4 + $0x8] sm:$0xff] (!%p216_p2) }
   0x6   : > { %219 = sbr.rel (%p216_p2) target bundleno = 657 (0x291), region = 40  ;;  %693 = vset.pattern.permute.xlu0 (!%p216_p2), %v702_v1  ;;  %v275_v2 = vld [vmem:[%s854_s2] sm:$0xff] (!%p216_p2)  ;;  %s704_s8 = smov (!%p216_p2), 17   ;;  %532 = vmatprep.mubr.f32.mxu0 (!%p216_p2), %v711_v13  ;;  %vm464_vm8 = vcmask (!%p216_p2), 588800   ;;  %vm549_vm9 = vcmask (!%p216_p2), 7168  }
   0x7   : > { %270 = vperm.xlu0 (!%p216_p2), %693, %v267_v0   ;;  %s705_s9 = smov (!%p216_p2), 15   ;;  %s706_s10 = smov (!%p216_p2), 1   ;;  %v787_v15 = vshrl.u32 (!%p216_p2), %v293_v14, 7  ;;  %v789_v18 = vand.u32 (!%p216_p2), 127, %v293_v14  ;;  %v795_v20 = vld [vmem:[%s856_s4] sm:$0xff] (!%p216_p2) }
   0x8   : > { %s707_s11 = smov (!%p216_p2), 127   ;;  %s708_s12 = smov (!%p216_p2), 113  }
   0x9   : > { %s709_s13 = smov (!%p216_p2), 112   ;;  %s710_s14 = smov (!%p216_p2), 111   ;;  %v300_v19 = vsub.s32 (!%p216_p2), 0, %v787_v15  ;;  %v319_v21 = vsub.s32 (!%p216_p2), 1, %v787_v15  ;;  %vm295_vm0 = vcmp.lt.s32.totalorder (!%p216_p2), %v789_v18, 17  ;;  %vm314_vm1 = vcmp.lt.s32.totalorder (!%p216_p2), %v789_v18, 16 }
   0xa   : > { %v338_v35 = vsub.s32 (!%p216_p2), 2, %v787_v15  ;;  %v357_v36 = vsub.s32 (!%p216_p2), 3, %v787_v15  ;;  %vm333_vm2 = vcmp.lt.s32.totalorder (!%p216_p2), %v789_v18, 15  ;;  %v378_v45 = vsub.s32 (!%p216_p2), 5, %v787_v15 }
   0xb   : > { %278 = vperm.xlu0 (!%p216_p2), %693, %v275_v2   ;;  %v301_v25 = vrot.slane (!%p216_p2), %v795_v20, %v300_v19  ;;  %v320_v26 = vrot.slane (!%p216_p2), %v795_v20, %v319_v21  ;;  %v305_v27 = vrot.slane (!%p216_p2), %v801_v22, %v300_v19  ;;  %v324_v28 = vrot.slane (!%p216_p2), %v801_v22, %v319_v21 }
   0xc   : > { %v339_v44 = vrot.slane (!%p216_p2), %v795_v20, %v338_v35  ;;  %v343_v47 = vrot.slane (!%p216_p2), %v801_v22, %v338_v35  ;;  %vm352_vm3 = vcmp.lt.s32.totalorder (!%p216_p2), %v789_v18, 1  ;;  %v358_v48 = vrot.slane (!%p216_p2), %v795_v20, %v357_v36 }
   0xd   : > { %s860_s22 = smov (!%p250_p3, %s640_s22), 1  ;;  %v362_v49 = vrot.slane %v801_v22, %v357_v36  ;;  %vm373_vm4 = vcmp.lt.s32.totalorder %v789_v18, 127  ;;  %v379_v55 = vrot.slane %v795_v20, %v378_v45  ;;  %v383_v56 = vrot.slane %v801_v22, %v378_v45 }
   0xe   : > { %s761_s27 = sshll.u32 %s860_s22, 4  ;;  %vm392_vm5 = vcmp.lt.s32.totalorder %v789_v18, 113  ;;  %vm411_vm6 = vcmp.lt.s32.totalorder %v789_v18, 112  ;;  %vm430_vm7 = vcmp.lt.s32.totalorder %v789_v18, 111 }
   0xf   : > { %s254_s30 = scalar_lea.vmem %s852_s0, %s761_s27  ;;  %s259_s29 = scalar_lea.vmem %s857_s5, %s761_s27 }
  0x10   : > { %v265_v4 = vld [vmem:[%s254_s30] sm:$0xff]  ;;  %v266_v5 = vld [vmem:[%s254_s30 + $0x8] sm:$0xff] }
  0x86   : > { %v271_v3 = vpop.permute.xlu0 %270 }
  0x87   : > { %v273_v6 = vmul.f32 %v271_v3, %v265_v4  ;;  %v274_v8 = vmul.f32 %v271_v3, %v266_v5  ;;  %v397_v3 = vsub.s32 6, %v787_v15 }
  0x89   : > { %v402_v14 = vrot.slane %v801_v22, %v397_v3 }
  0x8a   : > { %v279_v7 = vpop.permute.xlu0 %278 }
  0x8b   : > { %v281_v9 = vadd.f32 %v279_v7, %v273_v6  ;;  %v282_v10 = vadd.f32 %v279_v7, %v274_v8  ;;  %v416_v6 = vsub.s32 7, %v787_v15 }
  0x8d   : > { %v767_v11 = vmax.f32 %v281_v9, 0.0  ;;  %v771_v12 = vmax.f32 %v282_v10, 0.0  ;;  %v398_v10 = vrot.slane %v795_v20, %v397_v3  ;;  %v421_v15 = vrot.slane %v801_v22, %v416_v6 }
  0x8f   : > { %310 = vrot.lane.b32.xlu0 %v767_v11, %s703_s7  ;;  %289 = vrot.lane.b32.xlu1 %v767_v11, %s704_s8 }
  0x93   : > { %329 = vrot.lane.b32.xlu0 %v767_v11, %s705_s9  ;;  %291 = vrot.lane.b32.xlu1 %v771_v12, %s704_s8  ;;  %s264_s8 = scalar_lea.vmem %s858_s6, %s761_s27 }
  0x97   : > { %348 = vrot.lane.b32.xlu0 %v767_v11, %s706_s10  ;;  %312 = vrot.lane.b32.xlu1 %v771_v12, %s703_s7 }
  0x9b   : > { %369 = vrot.lane.b32.xlu0 %v767_v11, %s707_s11  ;;  %331 = vrot.lane.b32.xlu1 %v771_v12, %s705_s9 }
  0x9f   : > { %388 = vrot.lane.b32.xlu0 %v767_v11, %s708_s12  ;;  %350 = vrot.lane.b32.xlu1 %v771_v12, %s706_s10 }
  0xa3   : > { %407 = vrot.lane.b32.xlu0 %v767_v11, %s709_s13  ;;  %371 = vrot.lane.b32.xlu1 %v771_v12, %s707_s11 }
  0xa7   : > { %426 = vrot.lane.b32.xlu0 %v767_v11, %s710_s14  ;;  %390 = vrot.lane.b32.xlu1 %v771_v12, %s708_s12 }
  0xab   : > { %409 = vrot.lane.b32.xlu1 %v771_v12, %s709_s13 }
  0xaf   : > { %428 = vrot.lane.b32.xlu1 %v771_v12, %s710_s14 }
 0x101   : > { %v311_v16 = vpop.permute.xlu0 %310  ;;  %v290_v17 = vpop.permute.xlu1 %289 }
 0x105   : > { %v330_v23 = vpop.permute.xlu0 %329  ;;  %v292_v24 = vpop.permute.xlu1 %291 }
 0x106   : > { %v296_v29 = vsel %vm295_vm0, %v290_v17, %v292_v24  ;;  %v297_v30 = vsel %vm295_vm0, %v292_v24, %v290_v17 }
 0x107   : > { %v306_v37 = vmul.f32 %v301_v25, %v297_v30  ;;  %v307_v39 = vmul.f32 %v305_v27, %v296_v29  ;;  %v652_v27 = vld [vmem:[%s856_s4 + $0x18] ss:$0 sm:$0xff] }
 0x109   : > { %v349_v31 = vpop.permute.xlu0 %348  ;;  %v313_v32 = vpop.permute.xlu1 %312 }
 0x10a   : > { %v315_v33 = vsel %vm314_vm1, %v311_v16, %v313_v32  ;;  %v316_v34 = vsel %vm314_vm1, %v313_v32, %v311_v16  ;;  %v417_v16 = vrot.slane %v795_v20, %v416_v6 }
 0x10b   : > { %v325_v38 = vmul.f32 %v320_v26, %v316_v34  ;;  %v326_v40 = vmul.f32 %v324_v28, %v315_v33  ;;  %v445_v34 = vld [vmem:[%s855_s3] sm:$0xff] }
 0x10d   : > { %v332_v41 = vpop.permute.xlu1 %331  ;;  %v659_v42 = vpack.c.bf16 %v326_v40, %v307_v39  ;;  %v661_v43 = vpack.c.bf16 %v325_v38, %v306_v37  ;;  %v370_v46 = vpop.permute.xlu0 %369 }
 0x10e   : > { %v334_v50 = vsel %vm333_vm2, %v330_v23, %v332_v41  ;;  %v335_v51 = vsel %vm333_vm2, %v332_v41, %v330_v23 }
 0x10f   : > { %660 = vmatprep.subr.bf16.mxu0 %v659_v42  ;;  %v344_v57 = vmul.f32 %v339_v44, %v335_v51  ;;  %v345_v58 = vmul.f32 %v343_v47, %v334_v50 }
 0x110   : > { %662 = vmatpush1.bf16.msra.mxu0 %v661_v43 }
 0x111   : > { %v351_v52 = vpop.permute.xlu1 %350  ;;  %v389_v61 = vpop.permute.xlu0 %388 }
 0x112   : > { %v353_v53 = vsel %vm352_vm3, %v349_v31, %v351_v52  ;;  %v354_v54 = vsel %vm352_vm3, %v351_v52, %v349_v31  ;;  %v651_v31 = vld [vmem:[%s856_s4 + $0x10] ss:$0 sm:$0xff] }
 0x113   : > { %v363_v59 = vmul.f32 %v358_v48, %v354_v54  ;;  %v364_v60 = vmul.f32 %v362_v49, %v353_v53 }
 0x115   : > { %v372_v62 = vpop.permute.xlu1 %371  ;;  %v663_v63 = vpack.c.bf16 %v364_v60, %v345_v58  ;;  %v665_v0 = vpack.c.bf16 %v363_v59, %v344_v57  ;;  %v408_v13 = vpop.permute.xlu0 %407 }
 0x116   : > { %v374_v1 = vsel %vm373_vm4, %v370_v46, %v372_v62  ;;  %v375_v2 = vsel %vm373_vm4, %v372_v62, %v370_v46 }
 0x117   : > { %v384_v4 = vmul.f32 %v379_v55, %v374_v1  ;;  %v385_v5 = vmul.f32 %v383_v56, %v375_v2  ;;  %664 = vmatprep.subr.bf16.mxu0 %v663_v63 }
 0x118   : > { %666 = vmatpush1.bf16.msra.mxu0 %v665_v0 }
 0x119   : > { %v391_v7 = vpop.permute.xlu1 %390  ;;  %v667_v8 = vpack.c.bf16 %v385_v5, %v771_v12  ;;  %v669_v9 = vpack.c.bf16 %v384_v4, %v767_v11  ;;  %v427_v28 = vpop.permute.xlu0 %426 }
 0x11a   : > { %v393_v17 = vsel %vm392_vm5, %v389_v61, %v391_v7  ;;  %v394_v19 = vsel %vm392_vm5, %v391_v7, %v389_v61 }
 0x11b   : > { %668 = vmatprep.subr.bf16.mxu0 %v667_v8  ;;  %v403_v11 = vmul.f32 %v398_v10, %v393_v17  ;;  %v404_v24 = vmul.f32 %v402_v14, %v394_v19 }
 0x11c   : > { %670 = vmatpush1.bf16.msra.mxu0 %v669_v9 }
 0x11d   : > { %v410_v21 = vpop.permute.xlu1 %409 }
 0x11e   : > { %v412_v23 = vsel %vm411_vm6, %v408_v13, %v410_v21  ;;  %v413_v12 = vsel %vm411_vm6, %v410_v21, %v408_v13 }
 0x11f   : > { %v422_v25 = vmul.f32 %v417_v16, %v412_v23  ;;  %v423_v26 = vmul.f32 %v421_v15, %v413_v12 }
 0x121   : > { %v429_v20 = vpop.permute.xlu1 %428  ;;  %v671_v22 = vpack.c.bf16 %v423_v26, %v404_v24  ;;  %v673_v29 = vpack.c.bf16 %v422_v25, %v403_v11 }
 0x122   : > { %v432_v30 = vsel %vm430_vm7, %v429_v20, %v427_v28  ;;  %v431_v32 = vsel %vm430_vm7, %v427_v28, %v429_v20 }
 0x123   : > { %v442_v18 = vmul.f32 %v652_v27, %v432_v30  ;;  %672 = vmatprep.subr.bf16.mxu0 %v671_v22  ;;  %v441_v33 = vmul.f32 %v651_v31, %v431_v32 }
 0x124   : > { %674 = vmatpush1.bf16.msra.mxu0 %v673_v29 }
 0x125   : > { %484 = vmatprep.subr.mxu0 %v442_v18 }
 0x128   : > { %485 = vmatpush1.msra.mxu0 %v441_v33 }
 0x129   : > { %653 = vmatmul.mubr.msk.f32.vlgmr.msra.gmra.mrb[0].mxu0 %vm464_vm8, %v445_v34 }
 0x1fc   : > { %v534_v35 = vpop.f32.mrb[0].mxu0 }
 0x1fd   : > { %v536_v36 = vpop.f32.mrb[1].mxu0  ;;  %539 = vst [vmem:[%s259_s29] sm:$0xff] %v534_v35  ;;  %v541_v37 = vmul.f32 %v534_v35, %v534_v35 }
 0x1fe   : > { %540 = vst [vmem:[%s259_s29 + $0x8] sm:$0xff] %v536_v36  ;;  %v542_v38 = vmul.f32 %v536_v36, %v536_v36  ;;  %v543_v39 = vadd.f32 %v536_v36, %v534_v35 }
 0x200   : > { %544 = vadd.xlane.f32.xlu0 %v543_v39  ;;  %v546_v40 = vadd.f32 %v542_v38, %v541_v37 }
 0x202   : > { %547 = vadd.xlane.f32.xlu1 %v546_v40 }
 0x28d   : > { %v545_v41 = vpop.xlane.xlu0 %544 }
 0x28e   : > { %550 = vst.msk [vmem:[%s264_s8] sm:$0xff] %vm549_vm9, %v545_v41 }
 0x28f   : > { %v548_v42 = vpop.xlane.xlu1 %547 }
 0x290   : > { %551 = vst.msk [vmem:[%s264_s8 + $0x8] sm:$0xff] %vm549_vm9, %v548_v42 }
 0x291 PF: > { %s17_s21 = sadd.s32 1, %s700_s21  }
 0x292   : > { %p14_p4 = scmp.ge.s32.totalorder %s17_s21, 4  }
 0x294   :  { %16 = sbr.rel (!%p14_p4) target bundleno = 1 (0x1), region = 82 }

// kernel: bottleneck_forward.6
= control target key start
LH: loop header
LB: loop body
LE: loop exit
PB: predicated region body
PF: predicated region fallthrough
CT: control target
= control target key end

     0   :  { %s528_s18 = smov 0   ;;  %s564_s0 = inlined_call_operand.vmem [shape: f32[2,8,256], index: 0, kind: input, shape index: {}]   ;;  %s565_s1 = inlined_call_operand.vmem [shape: f32[8,1], index: 1, kind: input, shape index: {}]   ;;  %s566_s2 = inlined_call_operand.vmem [shape: f32[8,1], index: 2, kind: input, shape index: {}]   ;;  %s567_s3 = inlined_call_operand.vmem [shape: f32[16,8], index: 3, kind: input, shape index: {}]   ;;  %s568_s4 = inlined_call_operand.vmem [shape: f32[2,16,256], index: 4, kind: output, shape index: {0}]   ;;  %s569_s5 = inlined_call_operand.vmem [shape: f32[2,32,1], index: 5, kind: output, shape index: {1}]  }
   0x1 LB: > { %s457_s19 = sadd.s32 4294967295, %s494_s18   ;;  %p461_p0 = scmp.ge.s32.totalorder %s494_s18, 1  ;;  %s494_s18 = sphi %s528_s18, %s16_s18  }
   0x2   : > { %p190_p1 = scmp.lt.s32.totalorder %s494_s18, 3 }
   0x4   : > { %p191_p2 = pnand %p461_p0, %p190_p1 }
   0x5   : > { %v240_v0 = vld [vmem:[%s565_s1] sm:$0xff] (!%p191_p2)  ;;  %v496_v1 = vmov (!%p191_p2), 0   ;;  %v497_v3 = vmov (!%p191_p2), 0.0   ;;  %p223_p3 = scmp.lt.s32.totalorder (!%p191_p2), %s457_s19, 1  ;;  %vm260_vm0 = vcmask (!%p191_p2), 64512   ;;  %v259_v15 = vld [vmem:[%s567_s3 + $0x8] sm:$0xff] (!%p191_p2) }
   0x6   : > { %194 = sbr.rel (%p191_p2) target bundleno = 511 (0x1ff), region = 36  ;;  %487 = vset.pattern.permute.xlu0 (!%p191_p2), %v496_v1  ;;  %v248_v2 = vld [vmem:[%s566_s2] sm:$0xff] (!%p191_p2)  ;;  %331 = vmatprep.mubr.f32.mxu0 (!%p191_p2), %v497_v3  ;;  %vm364_vm1 = vcmask (!%p191_p2), 7168  }
   0x7   : > { %243 = vperm.xlu0 (!%p191_p2), %487, %v240_v0   ;;  %337 = vmatprep.mubr.f32.mxu1 (!%p191_p2), %v497_v3  ;;  %v258_v14 = vld [vmem:[%s567_s3] sm:$0xff] (!%p191_p2) }
   0xb   : > { %251 = vperm.xlu0 (!%p191_p2), %487, %v248_v2  }
   0xd   : > { %s571_s19 = smov (!%p223_p3, %s457_s19), 1 }
   0xe   : > { %s472_s24 = sshll.u32 %s571_s19, 4  ;;  %s473_s7 = sshll.u32 %s571_s19, 5 }
   0xf   : > { %s227_s27 = scalar_lea.vmem %s564_s0, %s472_s24  ;;  %s232_s10 = scalar_lea.vmem %s568_s4, %s473_s7 }
  0x10   : > { %v238_v5 = vld [vmem:[%s227_s27] sm:$0xff]  ;;  %v239_v6 = vld [vmem:[%s227_s27 + $0x8] sm:$0xff]  ;;  %s237_s13 = scalar_lea.vmem %s569_s5, %s473_s7 }
  0x86   : > { %v244_v4 = vpop.permute.xlu0 %243 }
  0x87   : > { %v246_v7 = vmul.f32 %v244_v4, %v238_v5  ;;  %v247_v8 = vmul.f32 %v244_v4, %v239_v6 }
  0x8a   : > { %v252_v9 = vpop.permute.xlu0 %251 }
  0x8b   : > { %v254_v10 = vadd.f32 %v252_v9, %v246_v7  ;;  %v255_v11 = vadd.f32 %v252_v9, %v247_v8 }
  0x8d   : > { %v257_v12 = vmax.f32 %v255_v11, 0.0  ;;  %v256_v13 = vmax.f32 %v254_v10, 0.0 }
  0x8f   : > { %267 = vmatprep.subr.mxu0 %v257_v12  ;;  %475 = vmatprep.subr.mxu1 %v257_v12 }
  0x90   : > { %268 = vmatpush1.msra.mxu0 %v256_v13  ;;  %476 = vmatpush1.msra.mxu1 %v256_v13 }
  0x91   : > { %468 = vmatmul.mubr.msk.f32.vlgmr.msra.gmra.mrb[0].mxu0 %vm260_vm0, %v258_v14  ;;  %469 = vmatmul.mubr.msk.f32.vlgmr.msra.gmra.mrb[0].mxu1 %vm260_vm0, %v259_v15 }
 0x164   : > { %v333_v16 = vpop.f32.mrb[0].mxu0  ;;  %v339_v17 = vpop.f32.mrb[0].mxu1 }
 0x165   : > { %344 = vst [vmem:[%s232_s10] sm:$0xff] %v333_v16  ;;  %v335_v18 = vpop.f32.mrb[1].mxu0  ;;  %346 = vst [vmem:[%s232_s10 + $0x10] sm:$0xff] %v339_v17  ;;  %v341_v19 = vpop.f32.mrb[1].mxu1  ;;  %v348_v20 = vmul.f32 %v333_v16, %v333_v16  ;;  %v350_v21 = vmul.f32 %v339_v17, %v339_v17 }
 0x166   : > { %345 = vst [vmem:[%s232_s10 + $0x8] sm:$0xff] %v335_v18  ;;  %v349_v22 = vmul.f32 %v335_v18, %v335_v18  ;;  %347 = vst [vmem:[%s232_s10 + $0x18] sm:$0xff] %v341_v19  ;;  %v351_v23 = vmul.f32 %v341_v19, %v341_v19  ;;  %v352_v24 = vadd.f32 %v335_v18, %v333_v16 }
 0x167   : > { %v355_v25 = vadd.f32 %v341_v19, %v339_v17 }
 0x168   : > { %353 = vadd.xlane.f32.xlu1 %v352_v24  ;;  %v358_v26 = vadd.f32 %v349_v22, %v348_v20  ;;  %v361_v27 = vadd.f32 %v351_v23, %v350_v21 }
 0x16a   : > { %359 = vadd.xlane.f32.xlu0 %v358_v26 }
 0x16c   : > { %356 = vadd.xlane.f32.xlu1 %v355_v25 }
 0x170   : > { %362 = vadd.xlane.f32.xlu1 %v361_v27 }
 0x1f5   : > { %v354_v28 = vpop.xlane.xlu1 %353 }
 0x1f6   : > { %365 = vst.msk [vmem:[%s237_s13] sm:$0xff] %vm364_vm1, %v354_v28 }
 0x1f7   : > { %v360_v29 = vpop.xlane.xlu0 %359 }
 0x1f8   : > { %367 = vst.msk [vmem:[%s237_s13 + $0x10] sm:$0xff] %vm364_vm1, %v360_v29 }
 0x1f9   : > { %v357_v30 = vpop.xlane.xlu1 %356 }
 0x1fa   : > { %366 = vst.msk [vmem:[%s237_s13 + $0x8] sm:$0xff] %vm364_vm1, %v357_v30 }
 0x1fd   : > { %v363_v31 = vpop.xlane.xlu1 %362 }
 0x1fe   : > { %368 = vst.msk [vmem:[%s237_s13 + $0x18] sm:$0xff] %vm364_vm1, %v363_v31 }
 0x1ff PF: > { %s16_s18 = sadd.s32 1, %s494_s18  }
 0x200   : > { %p13_p4 = scmp.ge.s32.totalorder %s16_s18, 4  }
 0x202   :  { %15 = sbr.rel (!%p13_p4) target bundleno = 1 (0x1), region = 78 }

// kernel: bottleneck_forward.7
= control target key start
LH: loop header
LB: loop body
LE: loop exit
PB: predicated region body
PF: predicated region fallthrough
CT: control target
= control target key end

     0   :  { %s398_s15 = smov 0   ;;  %s430_s0 = inlined_call_operand.vmem [shape: f32[2,16,256], index: 0, kind: input, shape index: {}]   ;;  %s431_s1 = inlined_call_operand.vmem [shape: f32[16,1], index: 1, kind: input, shape index: {}]   ;;  %s432_s2 = inlined_call_operand.vmem [shape: f32[16,1], index: 2, kind: input, shape index: {}]   ;;  %s433_s3 = inlined_call_operand.vmem [shape: f32[2,16,256], index: 3, kind: input, shape index: {}]   ;;  %s434_s4 = inlined_call_operand.vmem [shape: f32[2,16,256], index: 4, kind: output, shape index: {}]  }
   0x1 LB: > { %s337_s16 = sadd.s32 4294967295, %s370_s15   ;;  %p341_p0 = scmp.ge.s32.totalorder %s370_s15, 1  ;;  %s370_s15 = sphi %s398_s15, %s14_s15  }
   0x2   : > { %p172_p1 = scmp.lt.s32.totalorder %s370_s15, 3 }
   0x4   : > { %p173_p2 = pnand %p341_p0, %p172_p1 }
   0x5   : > { %v238_v0 = vld [vmem:[%s432_s2] sm:$0xff] (!%p173_p2)  ;;  %v372_v2 = vmov (!%p173_p2), 0   ;;  %v239_v3 = vld [vmem:[%s432_s2 + $0x8] sm:$0xff] (!%p173_p2)  ;;  %p203_p3 = scmp.lt.s32.totalorder (!%p173_p2), %s337_s16, 1 }
   0x6   : > { %176 = sbr.rel (%p173_p2) target bundleno = 148 (0x94), region = 36  ;;  %v222_v1 = vld [vmem:[%s431_s1] sm:$0xff] (!%p173_p2)  ;;  %363 = vset.pattern.permute.xlu1 (!%p173_p2), %v372_v2  ;;  %362 = vset.pattern.permute.xlu0 (!%p173_p2), %v372_v2  ;;  %v223_v4 = vld [vmem:[%s431_s1 + $0x8] sm:$0xff] (!%p173_p2) }
   0x7   : > { %242 = vperm.xlu1 (!%p173_p2), %363, %v238_v0   ;;  %226 = vperm.xlu0 (!%p173_p2), %362, %v222_v1  }
   0xb   : > { %247 = vperm.xlu1 (!%p173_p2), %363, %v239_v3   ;;  %231 = vperm.xlu0 (!%p173_p2), %362, %v223_v4  }
   0xd   : > { %s436_s16 = smov (!%p203_p3, %s337_s16), 1 }
   0xe   : > { %s350_s25 = sshll.u32 %s436_s16, 5 }
   0xf   : > { %s207_s28 = scalar_lea.vmem %s430_s0, %s350_s25  ;;  %s212_s5 = scalar_lea.vmem %s433_s3, %s350_s25 }
  0x10   : > { %v218_v5 = vld [vmem:[%s207_s28] sm:$0xff]  ;;  %v219_v6 = vld [vmem:[%s207_s28 + $0x8] sm:$0xff]  ;;  %v220_v13 = vld [vmem:[%s207_s28 + $0x10] sm:$0xff]  ;;  %s217_s8 = scalar_lea.vmem %s434_s4, %s350_s25 }
  0x11   : > { %v254_v11 = vld [vmem:[%s212_s5] sm:$0xff]  ;;  %v255_v12 = vld [vmem:[%s212_s5 + $0x8] sm:$0xff]  ;;  %v221_v14 = vld [vmem:[%s207_s28 + $0x18] sm:$0xff] }
  0x12   : > { %v256_v23 = vld [vmem:[%s212_s5 + $0x10] sm:$0xff]  ;;  %v257_v24 = vld [vmem:[%s212_s5 + $0x18] sm:$0xff] }
  0x86   : > { %v243_v7 = vpop.permute.xlu1 %242  ;;  %v227_v8 = vpop.permute.xlu0 %226 }
  0x87   : > { %v234_v9 = vmul.f32 %v227_v8, %v218_v5  ;;  %v235_v10 = vmul.f32 %v227_v8, %v219_v6 }
  0x89   : > { %v250_v15 = vadd.f32 %v243_v7, %v234_v9  ;;  %v251_v16 = vadd.f32 %v243_v7, %v235_v10 }
  0x8a   : > { %v232_v17 = vpop.permute.xlu0 %231  ;;  %v248_v22 = vpop.permute.xlu1 %247 }
  0x8b   : > { %v258_v18 = vadd.f32 %v254_v11, %v250_v15  ;;  %v259_v19 = vadd.f32 %v255_v12, %v251_v16  ;;  %v236_v20 = vmul.f32 %v232_v17, %v220_v13  ;;  %v237_v21 = vmul.f32 %v232_v17, %v221_v14 }
  0x8d   : > { %v262_v25 = vmax.f32 %v258_v18, 0.0  ;;  %v263_v26 = vmax.f32 %v259_v19, 0.0  ;;  %v252_v27 = vadd.f32 %v248_v22, %v236_v20  ;;  %v253_v28 = vadd.f32 %v248_v22, %v237_v21 }
  0x8f   : > { %266 = vst [vmem:[%s217_s8] sm:$0xff] %v262_v25  ;;  %267 = vst [vmem:[%s217_s8 + $0x8] sm:$0xff] %v263_v26  ;;  %v260_v29 = vadd.f32 %v256_v23, %v252_v27  ;;  %v261_v30 = vadd.f32 %v257_v24, %v253_v28 }
  0x91   : > { %v264_v31 = vmax.f32 %v260_v29, 0.0  ;;  %v265_v32 = vmax.f32 %v261_v30, 0.0 }
  0x93   : > { %268 = vst [vmem:[%s217_s8 + $0x10] sm:$0xff] %v264_v31  ;;  %269 = vst [vmem:[%s217_s8 + $0x18] sm:$0xff] %v265_v32 }
  0x94 PF: > { %s14_s15 = sadd.s32 1, %s370_s15  }
  0x95   : > { %p11_p4 = scmp.ge.s32.totalorder %s14_s15, 4  }
  0x97   :  { %13 = sbr.rel (!%p11_p4) target bundleno = 1 (0x1), region = 69 }

</bundles_post_ra>
